<compile_context>
chip_gen: v7x
topology: tpu7x:2x2x1
jax: 0.10.0
libtpu: 0.0.40
codegen_flags: <defaults>
</compile_context>

<pallas_src>
import jax
import jax.numpy as jnp
from jax.experimental import pallas as pl
from jax.experimental.pallas import tpu as pltpu

_SUBLANE = 8  # sublane width (second-to-last dim granularity)


def _round_up(x, m):
    return ((x + m - 1) // m) * m


def _cdiv(a, b):
    return -(-a // b)


# --------------------------------------------------------------------------
# Kernel: whole forward pass for one batch tile: 4 x (matmul + bias + softplus)
# --------------------------------------------------------------------------
def actor_kernel(x_ref,
                 w1_ref, b1_ref,
                 w2_ref, b2_ref,
                 w3_ref, b3_ref,
                 w4_ref, b4_ref,
                 o_ref):
    h = x_ref[...]

    def dense_softplus(h, w_ref, b_ref):
        z = jnp.dot(h, w_ref[...], preferred_element_type=jnp.float32)
        z = z + b_ref[...]                       # (1, out) broadcasts over batch
        # numerically-stable softplus: max(z,0) + log1p(exp(-|z|))  (EUP ops)
        return jnp.maximum(z, 0.0) + jnp.log1p(jnp.exp(-jnp.abs(z)))

    h = dense_softplus(h, w1_ref, b1_ref)
    h = dense_softplus(h, w2_ref, b2_ref)
    h = dense_softplus(h, w3_ref, b3_ref)
    h = dense_softplus(h, w4_ref, b4_ref)

    o_ref[...] = h.astype(o_ref.dtype)


# --------------------------------------------------------------------------
# One-time parameter prep (hoisted out of the forward path)
# --------------------------------------------------------------------------
def prepare_actor_params(torch_params):
    """PyTorch Linear layout (out,in)/(out,) -> kernel layout (in,out)/(1,out), f32.

    Call once (e.g. at load / after each optimizer step), NOT per forward.
    """
    prepped = {}
    for i in range(1, 5):
        w = jnp.asarray(torch_params[f"w{i}"], jnp.float32)
        b = jnp.asarray(torch_params[f"b{i}"], jnp.float32)
        prepped[f"w{i}"] = w.T                    # (in, out)
        prepped[f"b{i}"] = b.reshape(1, -1)       # (1, out)
    return prepped


# --------------------------------------------------------------------------
# Wrapper
# --------------------------------------------------------------------------
def actor_forward(state, params, block_b=2048):
    """state: (B, inputSize) f32.  params: w1..w4 (in,out), b1..b4 (1,out)."""
    B, in_size = state.shape
    out_size = params["w4"].shape[1]

    # ---- adaptive batch tiling -------------------------------------------
    # Enough tiles to cap the tile at block_b rows, and >= 2 tiles whenever
    # the batch is big enough so both v7x TensorCores get work (no-op on
    # v5e/v6e).  tb is a multiple of 8 (sublane), so at most 7 padded rows.
    n_tiles = max(_cdiv(B, block_b), 1)
    if B >= 2 * _SUBLANE:
        n_tiles = max(n_tiles, 2)
    tb = _round_up(_cdiv(B, n_tiles), _SUBLANE)
    grid_b = _cdiv(B, tb)
    b_p = grid_b * tb

    x = state.astype(jnp.float32)
    if b_p != B:
        # padded rows produce garbage outputs; they are sliced off below.
        x = jnp.pad(x, ((0, b_p - B), (0, 0)))

    # weights / biases: full-array blocks, constant index_map -> VMEM-resident
    resident = lambda arr: pl.BlockSpec(arr.shape, lambda i: (0, 0))

    out = pl.pallas_call(
        actor_kernel,
        out_shape=jax.ShapeDtypeStruct((b_p, out_size), jnp.float32),
        grid=(grid_b,),
        in_specs=[
            # activation tile: last dim == full array dim -> unpadded is legal
            pl.BlockSpec((tb, in_size), lambda i: (i, 0)),
            resident(params["w1"]), resident(params["b1"]),
            resident(params["w2"]), resident(params["b2"]),
            resident(params["w3"]), resident(params["b3"]),
            resident(params["w4"]), resident(params["b4"]),
        ],
        out_specs=pl.BlockSpec((tb, out_size), lambda i: (i, 0)),
        compiler_params=pltpu.CompilerParams(
            dimension_semantics=("parallel",)),           # v7x: 2 TCs
    )(x,
      params["w1"], params["b1"],
      params["w2"], params["b2"],
      params["w3"], params["b3"],
      params["w4"], params["b4"])

    return out[:B] if b_p != B else out


# --------------------------------------------------------------------------
# Init (PyTorch nn.Linear layout + default uniform +-1/sqrt(fan_in) init)
# --------------------------------------------------------------------------
def init_actor_params_torch_layout(key, input_size, nn_size, output_size):
    dims = [(input_size, nn_size), (nn_size, nn_size),
            (nn_size, nn_size), (nn_size, output_size)]
    params = {}
    for i, (fan_in, fan_out) in enumerate(dims, start=1):
        key, kw, kb = jax.random.split(key, 3)
        bound = 1.0 / jnp.sqrt(float(fan_in))
        params[f"w{i}"] = jax.random.uniform(
            kw, (fan_out, fan_in), jnp.float32, -bound, bound)   # (out, in)
        params[f"b{i}"] = jax.random.uniform(
            kb, (fan_out,), jnp.float32, -bound, bound)          # (out,)
    return params


def actor_ref(state, params):
    """Pure-JAX reference (matches PyTorch Actor.forward: softplus on all 4)."""
    h = state
    for i in range(1, 5):
        z = h @ params[f"w{i}"] + params[f"b{i}"]
        h = jax.nn.softplus(z)
    return h


if __name__ == "__main__":
    input_size, nn_size, output_size = 16, 32, 8
    batch = 2

    key = jax.random.PRNGKey(0)
    key, kx = jax.random.split(key)
    state = jax.random.normal(kx, (batch, input_size), jnp.float32)

    torch_params = init_actor_params_torch_layout(
        key, input_size, nn_size, output_size)
    params = prepare_actor_params(torch_params)   # one-time prep (hoisted)

    # small-batch case (single tile, tb=8)
    out = jax.block_until_ready(actor_forward(state, params))
    ref = actor_ref(state, params)
    assert out.shape == (batch, output_size), out.shape
    assert jnp.allclose(out, ref, atol=1e-5, rtol=1e-5), \
        f"max abs err = {jnp.max(jnp.abs(out - ref))}"

    # multi-tile case (exercises batch grid, adaptive tile and padded edge rows)
    key, kx2 = jax.random.split(key)
    state_big = jax.random.normal(kx2, (300, input_size), jnp.float32)
    out_big = jax.block_until_ready(actor_forward(state_big, params))
    ref_big = actor_ref(state_big, params)
    assert out_big.shape == (300, output_size), out_big.shape
    assert jnp.allclose(out_big, ref_big, atol=1e-5, rtol=1e-5), \
        f"max abs err (big) = {jnp.max(jnp.abs(out_big - ref_big))}"

    print("KERNEL_OK")
</pallas_src>

<mosaic_0001>
module attributes {stable_mosaic.version = 11 : i64} {
  func.func @actor_kernel(%arg0: i32, %arg1: memref<8x16xf32, #tpu.memory_space<vmem>>, %arg2: memref<16x32xf32, #tpu.memory_space<vmem>>, %arg3: memref<1x32xf32, #tpu.memory_space<vmem>>, %arg4: memref<32x32xf32, #tpu.memory_space<vmem>>, %arg5: memref<1x32xf32, #tpu.memory_space<vmem>>, %arg6: memref<32x32xf32, #tpu.memory_space<vmem>>, %arg7: memref<1x32xf32, #tpu.memory_space<vmem>>, %arg8: memref<32x8xf32, #tpu.memory_space<vmem>>, %arg9: memref<1x8xf32, #tpu.memory_space<vmem>>, %arg10: memref<8x8xf32, #tpu.memory_space<vmem>>) attributes {dimension_semantics = [#tpu.dimension_semantics<parallel>], iteration_bounds = array<i64: 1>, scalar_prefetch = 0 : i64, scratch_operands = 0 : i64, tpu.core_type = #tpu.core_type<tc>, window_params = [{transform_indices = @transform_0, window_bounds = array<i64: 8, 16>}, {pipeline_mode = #tpu.pipeline_mode<synchronous>, transform_indices = @transform_1, window_bounds = array<i64: 16, 32>}, {pipeline_mode = #tpu.pipeline_mode<synchronous>, transform_indices = @transform_2, window_bounds = array<i64: 1, 32>}, {pipeline_mode = #tpu.pipeline_mode<synchronous>, transform_indices = @transform_3, window_bounds = array<i64: 32, 32>}, {pipeline_mode = #tpu.pipeline_mode<synchronous>, transform_indices = @transform_4, window_bounds = array<i64: 1, 32>}, {pipeline_mode = #tpu.pipeline_mode<synchronous>, transform_indices = @transform_5, window_bounds = array<i64: 32, 32>}, {pipeline_mode = #tpu.pipeline_mode<synchronous>, transform_indices = @transform_6, window_bounds = array<i64: 1, 32>}, {pipeline_mode = #tpu.pipeline_mode<synchronous>, transform_indices = @transform_7, window_bounds = array<i64: 32, 8>}, {pipeline_mode = #tpu.pipeline_mode<synchronous>, transform_indices = @transform_8, window_bounds = array<i64: 1, 8>}, {transform_indices = @transform_9, window_bounds = array<i64: 8, 8>}]} {
    %c0 = arith.constant 0 : index
    %c0_0 = arith.constant 0 : index
    %0 = vector.load %arg1[%c0, %c0_0] : memref<8x16xf32, #tpu.memory_space<vmem>>, vector<8x16xf32>
    %c0_1 = arith.constant 0 : index
    %c0_2 = arith.constant 0 : index
    %1 = vector.load %arg2[%c0_1, %c0_2] : memref<16x32xf32, #tpu.memory_space<vmem>>, vector<16x32xf32>
    %cst = arith.constant dense<0.000000e+00> : vector<8x32xf32>
    %2 = tpu.matmul %0, %1, %cst {dimension_numbers = #tpu.dot_dimension_numbers<[1], [0], [0], [1], [0, 0, 1, 1], [], []>} : vector<8x16xf32>, vector<16x32xf32>, vector<8x32xf32> -> vector<8x32xf32>
    %c0_3 = arith.constant 0 : index
    %c0_4 = arith.constant 0 : index
    %3 = vector.load %arg3[%c0_3, %c0_4] : memref<1x32xf32, #tpu.memory_space<vmem>>, vector<1x32xf32>
    %4 = vector.broadcast %3 : vector<1x32xf32> to vector<8x32xf32>
    %5 = arith.addf %2, %4 : vector<8x32xf32>
    %cst_5 = arith.constant 0.000000e+00 : f32
    %6 = vector.broadcast %cst_5 : f32 to vector<8x32xf32>
    %7 = arith.maximumf %5, %6 : vector<8x32xf32>
    %8 = math.absf %5 : vector<8x32xf32>
    %cst_6 = arith.constant 0.000000e+00 : f32
    %9 = vector.broadcast %cst_6 : f32 to vector<8x32xf32>
    %10 = arith.subf %9, %8 : vector<8x32xf32>
    %11 = math.exp %10 : vector<8x32xf32>
    %12 = math.log1p %11 : vector<8x32xf32>
    %13 = arith.addf %7, %12 : vector<8x32xf32>
    %c0_7 = arith.constant 0 : index
    %c0_8 = arith.constant 0 : index
    %14 = vector.load %arg4[%c0_7, %c0_8] : memref<32x32xf32, #tpu.memory_space<vmem>>, vector<32x32xf32>
    %cst_9 = arith.constant dense<0.000000e+00> : vector<8x32xf32>
    %15 = tpu.matmul %13, %14, %cst_9 {dimension_numbers = #tpu.dot_dimension_numbers<[1], [0], [0], [1], [0, 0, 1, 1], [], []>} : vector<8x32xf32>, vector<32x32xf32>, vector<8x32xf32> -> vector<8x32xf32>
    %c0_10 = arith.constant 0 : index
    %c0_11 = arith.constant 0 : index
    %16 = vector.load %arg5[%c0_10, %c0_11] : memref<1x32xf32, #tpu.memory_space<vmem>>, vector<1x32xf32>
    %17 = vector.broadcast %16 : vector<1x32xf32> to vector<8x32xf32>
    %18 = arith.addf %15, %17 : vector<8x32xf32>
    %cst_12 = arith.constant 0.000000e+00 : f32
    %19 = vector.broadcast %cst_12 : f32 to vector<8x32xf32>
    %20 = arith.maximumf %18, %19 : vector<8x32xf32>
    %21 = math.absf %18 : vector<8x32xf32>
    %cst_13 = arith.constant 0.000000e+00 : f32
    %22 = vector.broadcast %cst_13 : f32 to vector<8x32xf32>
    %23 = arith.subf %22, %21 : vector<8x32xf32>
    %24 = math.exp %23 : vector<8x32xf32>
    %25 = math.log1p %24 : vector<8x32xf32>
    %26 = arith.addf %20, %25 : vector<8x32xf32>
    %c0_14 = arith.constant 0 : index
    %c0_15 = arith.constant 0 : index
    %27 = vector.load %arg6[%c0_14, %c0_15] : memref<32x32xf32, #tpu.memory_space<vmem>>, vector<32x32xf32>
    %cst_16 = arith.constant dense<0.000000e+00> : vector<8x32xf32>
    %28 = tpu.matmul %26, %27, %cst_16 {dimension_numbers = #tpu.dot_dimension_numbers<[1], [0], [0], [1], [0, 0, 1, 1], [], []>} : vector<8x32xf32>, vector<32x32xf32>, vector<8x32xf32> -> vector<8x32xf32>
    %c0_17 = arith.constant 0 : index
    %c0_18 = arith.constant 0 : index
    %29 = vector.load %arg7[%c0_17, %c0_18] : memref<1x32xf32, #tpu.memory_space<vmem>>, vector<1x32xf32>
    %30 = vector.broadcast %29 : vector<1x32xf32> to vector<8x32xf32>
    %31 = arith.addf %28, %30 : vector<8x32xf32>
    %cst_19 = arith.constant 0.000000e+00 : f32
    %32 = vector.broadcast %cst_19 : f32 to vector<8x32xf32>
    %33 = arith.maximumf %31, %32 : vector<8x32xf32>
    %34 = math.absf %31 : vector<8x32xf32>
    %cst_20 = arith.constant 0.000000e+00 : f32
    %35 = vector.broadcast %cst_20 : f32 to vector<8x32xf32>
    %36 = arith.subf %35, %34 : vector<8x32xf32>
    %37 = math.exp %36 : vector<8x32xf32>
    %38 = math.log1p %37 : vector<8x32xf32>
    %39 = arith.addf %33, %38 : vector<8x32xf32>
    %c0_21 = arith.constant 0 : index
    %c0_22 = arith.constant 0 : index
    %40 = vector.load %arg8[%c0_21, %c0_22] : memref<32x8xf32, #tpu.memory_space<vmem>>, vector<32x8xf32>
    %cst_23 = arith.constant dense<0.000000e+00> : vector<8x8xf32>
    %41 = tpu.matmul %39, %40, %cst_23 {dimension_numbers = #tpu.dot_dimension_numbers<[1], [0], [0], [1], [0, 0, 1, 1], [], []>} : vector<8x32xf32>, vector<32x8xf32>, vector<8x8xf32> -> vector<8x8xf32>
    %c0_24 = arith.constant 0 : index
    %c0_25 = arith.constant 0 : index
    %42 = vector.load %arg9[%c0_24, %c0_25] : memref<1x8xf32, #tpu.memory_space<vmem>>, vector<1x8xf32>
    %43 = vector.broadcast %42 : vector<1x8xf32> to vector<8x8xf32>
    %44 = arith.addf %41, %43 : vector<8x8xf32>
    %cst_26 = arith.constant 0.000000e+00 : f32
    %45 = vector.broadcast %cst_26 : f32 to vector<8x8xf32>
    %46 = arith.maximumf %44, %45 : vector<8x8xf32>
    %47 = math.absf %44 : vector<8x8xf32>
    %cst_27 = arith.constant 0.000000e+00 : f32
    %48 = vector.broadcast %cst_27 : f32 to vector<8x8xf32>
    %49 = arith.subf %48, %47 : vector<8x8xf32>
    %50 = math.exp %49 : vector<8x8xf32>
    %51 = math.log1p %50 : vector<8x8xf32>
    %52 = arith.addf %46, %51 : vector<8x8xf32>
    %c0_28 = arith.constant 0 : index
    %c0_29 = arith.constant 0 : index
    %53 = vector.load %arg10[%c0_28, %c0_29] : memref<8x8xf32, #tpu.memory_space<vmem>>, vector<8x8xf32>
    tpu.vector_store %arg10[%c0_28, %c0_29], %52 {strides = array<i32>} : memref<8x8xf32, #tpu.memory_space<vmem>>, vector<8x8xf32>,
    return
  }
  func.func @transform_0(%arg0: i32) -> (i32, i32) {
    %c0_i32 = arith.constant 0 : i32
    %c0_i32_0 = arith.constant 0 : i32
    return %arg0, %c0_i32 : i32, i32
  }
  func.func @transform_1(%arg0: i32) -> (i32, i32) {
    %c0_i32 = arith.constant 0 : i32
    %c0_i32_0 = arith.constant 0 : i32
    %c0_i32_1 = arith.constant 0 : i32
    return %c0_i32, %c0_i32_0 : i32, i32
  }
  func.func @transform_2(%arg0: i32) -> (i32, i32) {
    %c0_i32 = arith.constant 0 : i32
    %c0_i32_0 = arith.constant 0 : i32
    %c0_i32_1 = arith.constant 0 : i32
    return %c0_i32, %c0_i32_0 : i32, i32
  }
  func.func @transform_3(%arg0: i32) -> (i32, i32) {
    %c0_i32 = arith.constant 0 : i32
    %c0_i32_0 = arith.constant 0 : i32
    %c0_i32_1 = arith.constant 0 : i32
    return %c0_i32, %c0_i32_0 : i32, i32
  }
  func.func @transform_4(%arg0: i32) -> (i32, i32) {
    %c0_i32 = arith.constant 0 : i32
    %c0_i32_0 = arith.constant 0 : i32
    %c0_i32_1 = arith.constant 0 : i32
    return %c0_i32, %c0_i32_0 : i32, i32
  }
  func.func @transform_5(%arg0: i32) -> (i32, i32) {
    %c0_i32 = arith.constant 0 : i32
    %c0_i32_0 = arith.constant 0 : i32
    %c0_i32_1 = arith.constant 0 : i32
    return %c0_i32, %c0_i32_0 : i32, i32
  }
  func.func @transform_6(%arg0: i32) -> (i32, i32) {
    %c0_i32 = arith.constant 0 : i32
    %c0_i32_0 = arith.constant 0 : i32
    %c0_i32_1 = arith.constant 0 : i32
    return %c0_i32, %c0_i32_0 : i32, i32
  }
  func.func @transform_7(%arg0: i32) -> (i32, i32) {
    %c0_i32 = arith.constant 0 : i32
    %c0_i32_0 = arith.constant 0 : i32
    %c0_i32_1 = arith.constant 0 : i32
    return %c0_i32, %c0_i32_0 : i32, i32
  }
  func.func @transform_8(%arg0: i32) -> (i32, i32) {
    %c0_i32 = arith.constant 0 : i32
    %c0_i32_0 = arith.constant 0 : i32
    %c0_i32_1 = arith.constant 0 : i32
    return %c0_i32, %c0_i32_0 : i32, i32
  }
  func.func @transform_9(%arg0: i32) -> (i32, i32) {
    %c0_i32 = arith.constant 0 : i32
    %c0_i32_0 = arith.constant 0 : i32
    return %arg0, %c0_i32 : i32, i32
  }
}

</mosaic_0001>

<bundles_post_ra>
// kernel: tpu_custom_call.1
= control target key start
LH: loop header
LB: loop body
LE: loop exit
PB: predicated region body
PF: predicated region fallthrough
CT: control target
= control target key end

     0   :  { %14 = vsyncpa [#allocation3], 0  ;;  %s814_s0 = inlined_call_operand.hbm [shape: f32[8,16], index: 0, kind: input, shape index: {}]   ;;  %s815_s1 = inlined_call_operand.vmem [shape: f32[16,32], index: 1, kind: input, shape index: {}]   ;;  %s816_s2 = inlined_call_operand.vmem [shape: f32[1,32], index: 2, kind: input, shape index: {}]   ;;  %s817_s3 = inlined_call_operand.vmem [shape: f32[32,32], index: 3, kind: input, shape index: {}]   ;;  %s818_s4 = inlined_call_operand.vmem [shape: f32[1,32], index: 4, kind: input, shape index: {}]   ;;  %s819_s5 = inlined_call_operand.hbm [shape: f32[32,32], index: 5, kind: input, shape index: {}]   ;;  %s820_s6 = inlined_call_operand.vmem [shape: f32[1,32], index: 6, kind: input, shape index: {}]   ;;  %s821_s7 = inlined_call_operand.vmem [shape: f32[32,8], index: 7, kind: input, shape index: {}]   ;;  %s822_s8 = inlined_call_operand.vmem [shape: f32[1,8], index: 8, kind: input, shape index: {}]   ;;  %s823_s9 = inlined_call_operand.hbm [shape: f32[8,8], index: 9, kind: output, shape index: {}]  }
   0x1   :  { %15 = vsyncpa [#allocation6], 0 }
   0x2   :  { %16 = vsyncpa [#allocation4], 0  ;;  %s657_s30 = smov [#allocation2]   ;;  %s658_s11 = smov [#allocation5]  }
   0x3   :  { %s23_s10 = sshll.u32 %s657_s30, 4  ;;  %s40_s12 = sshll.u32 %s658_s11, 4  ;;  %s24_s10 = int_to_ptr.vmem [resolvable:$true] %s23_s10  ;;  %s715_s12 = int_to_ptr.vmem [resolvable:$true] %s40_s12 }
   0x4   :  { %s585_s15 = scalar_lea.hbm %s814_s0, 128 }
   0x5   :  { %p586_p0 = scmp.ne.s32.totalorder %s814_s0, %s585_s15  ;;  %p589_p1 = scmp.lt.u32.totalorder %s585_s15, %s814_s0 }
   0x7   :  { %p591_p2 = pnand %p589_p1, %p586_p0 }
   0x9   :  { %594 = shalt.err (!%p591_p2)
}
   0xa   :  { %s595_s20 = scalar_lea.vmem %s24_s10, 128  ;;  %p600_p4 = scmp.lt.s32.totalorder %s24_s10, %s24_s10 }
   0xb   :  { %p596_p3 = scmp.ne.s32.totalorder %s24_s10, %s595_s20  ;;  %p601_p5 = scmp.lt.s32.totalorder %s595_s20, %s595_s20 }
   0xd   :  { %p602_p6 = por %p601_p5, %p600_p4 }
   0xf   :  { %p603_p7 = pnand %p602_p6, %p596_p3 }
  0x11   :  { %606 = shalt.err (!%p603_p7)
}
  0x12   :  { %26 = dma.hbm_to_vmem [thread:$0]  %s814_s0, 128, %s24_s10, [#allocation3]  }
  0x13   :  { %s607_s25 = scalar_lea.hbm %s819_s5, 512 }
  0x14   :  { %p608_p8 = scmp.ne.s32.totalorder %s819_s5, %s607_s25  ;;  %p611_p9 = scmp.lt.u32.totalorder %s607_s25, %s819_s5 }
  0x16   :  { %p613_p10 = pnand %p611_p9, %p608_p8 }
  0x18   :  { %616 = shalt.err (!%p613_p10)
}
  0x19   :  { %s617_s30 = scalar_lea.vmem %s715_s12, 512  ;;  %p622_p12 = scmp.lt.s32.totalorder %s715_s12, %s715_s12 }
  0x1a   :  { %p618_p11 = scmp.ne.s32.totalorder %s715_s12, %s617_s30  ;;  %p623_p13 = scmp.lt.s32.totalorder %s617_s30, %s617_s30 }
  0x1c   :  { %p624_p0 = por %p623_p13, %p622_p12 }
  0x1e   :  { %p625_p1 = pnand %p624_p0, %p618_p11 }
  0x20   :  { %628 = shalt.err (!%p625_p1)
}
  0x21   :  { %s659_s0 = smov 128   ;;  %s660_s10 = smov 8  }
  0x22   :  { %46 = dma.hbm_to_vmem [thread:$0]  %s819_s5, 512, %s715_s12, [#allocation6], %s659_s0, %s659_s0, %s660_s10  }
  0x23   :  { %651 = dma.done.wait [#allocation3], 128  }
  0x24   :  { %652 = vsyncadd [#allocation3], 4294967168 }
  0x25   :  { %653 = dma.done.wait [#allocation6], 512  }
  0x26   :  { %654 = vsyncadd [#allocation6], 4294966784  ;;  %v661_v0 = vmov 0.0|0.0   ;;  %vm662_vm0 = vmmov 0   ;;  %v663_v1 = vmov 0.0   ;;  %v60_v2 = vld [vmem:[%s815_s1] sm:$0xff] }
  0x27   :  { %540 = vmatprep.subr.bf16.mxu0 %v661_v0  ;;  %504 = vmatprep.mubr.msk.f32.mxu0 %vm662_vm0, %v663_v1  ;;  %v61_v3 = vld [vmem:[%s815_s1 + $0x8] sm:$0xff]  ;;  %v59_v5 = vld [vmem:[#allocation2] sm:$0xff]  ;;  %vm69_vm1 = vcmask 130048   ;;  %v160_v9 = vld [vmem:[%s817_s3 + $0x10] sm:$0xff]  ;;  %vm169_vm3 = vcmask 261120   ;;  %s664_s13 = smov [#allocation7]  }
  0x28   :  { %543 = vmatprep.subr.bf16.mxu1 %v661_v0  ;;  %515 = vmatprep.mubr.msk.f32.mxu1 %vm662_vm0, %v663_v1  ;;  %v541_v4 = vpack.c.bf16 %v61_v3, %v60_v2  ;;  %v158_v6 = vld [vmem:[%s817_s3] sm:$0xff]  ;;  %v159_v7 = vld [vmem:[%s817_s3 + $0x8] sm:$0xff]  ;;  %v161_v10 = vld [vmem:[%s817_s3 + $0x18] sm:$0xff]  ;;  %s464_s14 = sshll.u32 %s664_s13, 4  ;;  %vm456_vm7 = vcmask 64512   ;;  %s465_s14 = int_to_ptr.vmem [resolvable:$true] %s464_s14 }
  0x29   :  { %v544_v8 = vpack.c.bf16 %v159_v7, %v158_v6  ;;  %v547_v11 = vpack.c.bf16 %v161_v10, %v160_v9  ;;  %v474_v12 = vld [vmem:[%s816_s2] ss:$0 sm:$0xff]  ;;  %v258_v30 = vld [vmem:[#allocation5] sm:$0xff]  ;;  %v259_v31 = vld [vmem:[#allocation5 + $0x8] sm:$0xff]  ;;  %p634_p3 = scmp.lt.s32.totalorder %s465_s14, %s465_s14 }
  0x2a   :  { %542 = vmatpush3.bf16.msra.mxu0 %v541_v4  ;;  %v550_v32 = vpack.c.bf16 %v259_v31, %v258_v30  ;;  %v260_v33 = vld [vmem:[#allocation5 + $0x10] sm:$0xff]  ;;  %v261_v34 = vld [vmem:[#allocation5 + $0x18] sm:$0xff]  ;;  %v358_v55 = vld [vmem:[%s821_s7 + $0x8] sm:$0xff] }
  0x2b   :  { %549 = vmatprep.subr.bf16.mxu0 %v661_v0  ;;  %545 = vmatpush3.bf16.msra.mxu1 %v544_v8  ;;  %v553_v35 = vpack.c.bf16 %v261_v34, %v260_v33  ;;  %v476_v36 = vld [vmem:[%s818_s4] ss:$0 sm:$0xff]  ;;  %v359_v57 = vld [vmem:[%s821_s7 + $0x10] sm:$0xff]  ;;  %v360_v58 = vld [vmem:[%s821_s7 + $0x18] sm:$0xff] }
  0x2c   :  { %546 = vmatprep.subr.bf16.mxu1 %v661_v0  ;;  %v357_v54 = vld [vmem:[%s821_s7] sm:$0xff]  ;;  %v559_v59 = vpack.c.bf16 %v360_v58, %v359_v57 }
  0x2d   :  { %505 = vmatmul.mubr.msk.f32.vlgmr.msra.gmra.mrb[0].mxu0 %vm69_vm1, %v59_v5  ;;  %v556_v56 = vpack.c.bf16 %v358_v55, %v357_v54  ;;  %v478_v60 = vld [vmem:[%s820_s6] ss:$0 sm:$0xff] }
  0x2e   :  { %526 = vmatprep.mubr.msk.f32.mxu0 %vm662_vm0, %v663_v1  ;;  %551 = vmatpush3.bf16.msra.mxu0 %v550_v32 }
  0x2f   :  { %548 = vmatpush3.bf16.msra.mxu1 %v547_v11  ;;  %552 = vmatprep.subr.bf16.mxu0 %v661_v0 }
  0x30   :  { %555 = vmatprep.subr.bf16.mxu1 %v661_v0 }
  0x32   :  { %554 = vmatpush3.bf16.msra.mxu0 %v553_v35 }
 0x100   :  { %v139_v13 = vpop.f32.mrb[0].mxu0 }
 0x101   :  { %v140_v14 = vadd.f32 %v474_v12, %v139_v13  ;;  %v506_v15 = vpop.f32.mrb[1].mxu0 }
 0x103   :  { %v144_v16 = vand.u32 2147483647, %v140_v14  ;;  %v143_v27 = vmax.f32 %v140_v14, 0.0  ;;  %v480_v14 = vld [vmem:[%s822_s8] ss:$0 sm:$0xff]  ;;  %s629_s8 = scalar_lea.vmem %s465_s14, 128 }
 0x104   :  { %p630_p2 = scmp.ne.s32.totalorder %s465_s14, %s629_s8  ;;  %p635_p4 = scmp.lt.s32.totalorder %s629_s8, %s629_s8 }
 0x105   :  { %v145_v17 = vsub.f32 0.0, %v144_v16 }
 0x106   :  { %p636_p5 = por %p635_p4, %p634_p3 }
 0x107   :  { %v146_v18 = vmul.f32 1.442695, %v145_v17 }
 0x108   :  { %p637_p6 = pnand %p636_p5, %p630_p2 }
 0x109   :  { %569 = vpow2.f32 %v146_v18 }
 0x113   :  { %v570_v19 = vpop.eup %569 }
 0x114   :  { %v148_v20 = vadd.f32 1.0, %v570_v19  ;;  %v151_v21 = vmul.f32 -0.5, %v570_v19  ;;  %v154_v23 = vand.u32 2147483647, %v570_v19 }
 0x116   :  { %571 = vlog2.f32 %v148_v20  ;;  %v152_v22 = vadd.f32 1.0, %v151_v21  ;;  %vm155_vm2 = vcmp.lt.f32.partialorder %v154_v23, 0.0004427343 }
 0x118   :  { %v153_v26 = vmul.f32 %v570_v19, %v152_v22 }
 0x120   :  { %v572_v24 = vpop.eup %571 }
 0x121   :  { %v150_v25 = vmul.f32 0.6931472, %v572_v24 }
 0x123   :  { %v156_v28 = vsel %vm155_vm2, %v153_v26, %v150_v25 }
 0x124   :  { %v157_v29 = vadd.f32 %v156_v28, %v143_v27 }
 0x126   :  { %516 = vmatmul.mubr.msk.f32.vlgmr.msra.gmra.mrb[0].mxu1 %vm169_vm3, %v157_v29 }
 0x127   :  { %537 = vmatprep.mubr.msk.f32.mxu1 %vm662_vm0, %v663_v1  ;;  %557 = vmatpush3.bf16.msra.mxu1 %v556_v56 }
 0x128   :  { %558 = vmatprep.subr.bf16.mxu1 %v661_v0 }
 0x12b   :  { %560 = vmatpush3.bf16.msra.mxu1 %v559_v59 }
 0x1f9   :  { %v239_v37 = vpop.f32.mrb[0].mxu1 }
 0x1fa   :  { %v240_v38 = vadd.f32 %v476_v36, %v239_v37  ;;  %v517_v39 = vpop.f32.mrb[1].mxu1 }
 0x1fc   :  { %v244_v40 = vand.u32 2147483647, %v240_v38  ;;  %v243_v51 = vmax.f32 %v240_v38, 0.0 }
 0x1fe   :  { %v245_v41 = vsub.f32 0.0, %v244_v40 }
 0x200   :  { %v246_v42 = vmul.f32 1.442695, %v245_v41 }
 0x202   :  { %573 = vpow2.f32 %v246_v42 }
 0x20c   :  { %v574_v43 = vpop.eup %573 }
 0x20d   :  { %v248_v44 = vadd.f32 1.0, %v574_v43  ;;  %v251_v45 = vmul.f32 -0.5, %v574_v43  ;;  %v254_v47 = vand.u32 2147483647, %v574_v43 }
 0x20f   :  { %575 = vlog2.f32 %v248_v44  ;;  %v252_v46 = vadd.f32 1.0, %v251_v45  ;;  %vm255_vm4 = vcmp.lt.f32.partialorder %v254_v47, 0.0004427343 }
 0x211   :  { %v253_v50 = vmul.f32 %v574_v43, %v252_v46 }
 0x219   :  { %v576_v48 = vpop.eup %575 }
 0x21a   :  { %v250_v49 = vmul.f32 0.6931472, %v576_v48 }
 0x21c   :  { %v256_v52 = vsel %vm255_vm4, %v253_v50, %v250_v49 }
 0x21d   :  { %v257_v53 = vadd.f32 %v256_v52, %v243_v51 }
 0x21f   :  { %527 = vmatmul.mubr.msk.f32.vlgmr.msra.gmra.mrb[2].mxu0 %vm169_vm3, %v257_v53 }
 0x2f2   :  { %v338_v61 = vpop.f32.mrb[2].mxu0 }
 0x2f3   :  { %v339_v62 = vadd.f32 %v478_v60, %v338_v61  ;;  %v528_v63 = vpop.f32.mrb[3].mxu0 }
 0x2f5   :  { %v343_v1 = vand.u32 2147483647, %v339_v62  ;;  %v342_v11 = vmax.f32 %v339_v62, 0.0 }
 0x2f7   :  { %v344_v2 = vsub.f32 0.0, %v343_v1 }
 0x2f9   :  { %v345_v0 = vmul.f32 1.442695, %v344_v2 }
 0x2fb   :  { %577 = vpow2.f32 %v345_v0 }
 0x305   :  { %v578_v3 = vpop.eup %577 }
 0x306   :  { %v347_v4 = vadd.f32 1.0, %v578_v3  ;;  %v350_v5 = vmul.f32 -0.5, %v578_v3  ;;  %v353_v7 = vand.u32 2147483647, %v578_v3 }
 0x308   :  { %579 = vlog2.f32 %v347_v4  ;;  %v351_v6 = vadd.f32 1.0, %v350_v5  ;;  %vm354_vm5 = vcmp.lt.f32.partialorder %v353_v7, 0.0004427343 }
 0x30a   :  { %v352_v10 = vmul.f32 %v578_v3, %v351_v6 }
 0x312   :  { %v580_v8 = vpop.eup %579 }
 0x313   :  { %v349_v9 = vmul.f32 0.6931472, %v580_v8 }
 0x315   :  { %v355_v12 = vsel %vm354_vm5, %v352_v10, %v349_v9 }
 0x316   :  { %v356_v13 = vadd.f32 %v355_v12, %v342_v11 }
 0x318   :  { %538 = vmatmul.mubr.msk.f32.vlgmr.msra.gmra.mrb[2].mxu1 %vm169_vm3, %v356_v13 }
 0x3eb   :  { %v437_v15 = vpop.f32.mrb[2].mxu1 }
 0x3ec   :  { %v438_v16 = vadd.f32 %v480_v14, %v437_v15  ;;  %v539_v17 = vpop.f32.mrb[3].mxu1 }
 0x3ee   :  { %v442_v18 = vand.u32 2147483647, %v438_v16  ;;  %v441_v29 = vmax.f32 %v438_v16, 0.0 }
 0x3f0   :  { %v443_v19 = vsub.f32 0.0, %v442_v18 }
 0x3f2   :  { %v444_v20 = vmul.f32 1.442695, %v443_v19 }
 0x3f4   :  { %581 = vpow2.f32 %v444_v20 }
 0x3fe   :  { %v582_v21 = vpop.eup %581 }
 0x3ff   :  { %v446_v22 = vadd.f32 1.0, %v582_v21  ;;  %v449_v23 = vmul.f32 -0.5, %v582_v21  ;;  %v452_v25 = vand.u32 2147483647, %v582_v21 }
 0x401   :  { %583 = vlog2.f32 %v446_v22  ;;  %v450_v24 = vadd.f32 1.0, %v449_v23  ;;  %vm453_vm6 = vcmp.lt.f32.partialorder %v452_v25, 0.0004427343 }
 0x403   :  { %v451_v28 = vmul.f32 %v582_v21, %v450_v24 }
 0x40b   :  { %v584_v26 = vpop.eup %583 }
 0x40c   :  { %v448_v27 = vmul.f32 0.6931472, %v584_v26 }
 0x40e   :  { %v454_v30 = vsel %vm453_vm6, %v451_v28, %v448_v27 }
 0x40f   :  { %v455_v31 = vadd.f32 %v454_v30, %v441_v29 }
 0x411   :  { %457 = vst.msk [vmem:[#allocation7] sm:$0xff] %vm456_vm7, %v455_v31 }
 0x412   :  { %640 = shalt.err (!%p637_p6)
}
 0x413   :  { %s641_s12 = scalar_lea.hbm %s823_s9, 128 }
 0x414   :  { %p642_p7 = scmp.ne.s32.totalorder %s823_s9, %s641_s12  ;;  %p645_p8 = scmp.lt.u32.totalorder %s641_s12, %s823_s9 }
 0x416   :  { %p647_p9 = pnand %p645_p8, %p642_p7 }
 0x418   :  { %650 = shalt.err (!%p647_p9)
}
 0x419   :  { %467 = dma.vmem_to_hbm [thread:$0]  %s465_s14, 128, %s823_s9, [#allocation4]  }
 0x41a   :  { %655 = dma.done.wait [#allocation4], 128  }
 0x41b   :  { %656 = vsyncadd [#allocation4], 4294967168 }
 0x41c   :  { %471 = vsyncpa [#allocation3], 1 }
 0x41d   :  { %472 = vsyncpa [#allocation6], 1 }
 0x41e   :  { %473 = vsyncpa [#allocation4], 1 }

</bundles_post_ra>
